<compile_context>
chip_gen: v6e
topology: v6e:2x2x1
jax: 0.10.0
libtpu: 0.0.40
codegen_flags: <defaults>
</compile_context>

<pallas_src>
import functools

import jax
import jax.numpy as jnp
from jax.experimental import pallas as pl
from jax.experimental.pallas import tpu as pltpu


# --------------------- kernel 1: LayerNorm + to_qkv (head-major) -------------

def _ln_qkv_kernel(x_ref, g_ref, b_ref, w_ref, o_ref, *, compute_dtype):
    x = x_ref[0]                                        # (TN, DIM)
    mu = jnp.mean(x, axis=-1, keepdims=True)
    xc = x - mu
    var = jnp.mean(xc * xc, axis=-1, keepdims=True)
    y = xc * jax.lax.rsqrt(var + 1e-5) * g_ref[...] + b_ref[...]

    yc = y.astype(compute_dtype)
    w = w_ref[...].astype(compute_dtype)                # (3H, DIM, DH)
    for s in range(w.shape[0]):                         # static, 3*heads small
        o_ref[0, s] = jnp.dot(yc, w[s], preferred_element_type=jnp.float32)


# ---------------- kernel 2: equivariant attention (i-tile of rows) -----------

def _eq_attn_kernel(q_ref, k_ref, v_ref, ci_ref, ct_ref, basis_ref,
                    we1_ref, be1_ref, we2_ref, be2_ref,
                    wca1_ref, bca1_ref, wca2_ref, bca2_ref,
                    wo_ref, bo_ref,
                    out_ref, cout_ref, *, compute_dtype, approx_recip):
    f32 = jnp.float32
    cdt = compute_dtype

    q = q_ref[0]            # (H, TI, DH)  query rows of this i-tile
    k = k_ref[0]            # (H, N,  DH)
    v = v_ref[0]            # (H, N,  DH)
    ci = ci_ref[0]          # (TI, 3)      coors of the i-tile
    ct = ct_ref[0]          # (3, N)       all coors, lane-dense
    basis = basis_ref[0]    # (3, TI, N)   lane-dense rel-coors basis

    h, ti, dh = q.shape
    n = k.shape[1]

    # rel_dist[i,j] = |x_i|^2 + |x_j|^2 - 2<x_i,x_j>  (Gram trick, clamped >=0)
    sq_i = jnp.sum(ci * ci, axis=-1, keepdims=True)                    # (TI, 1)
    sq_j = jnp.sum(ct * ct, axis=0, keepdims=True)                     # (1, N)
    gram = jnp.dot(ci, ct, preferred_element_type=f32)                 # (TI, N)
    rel_dist = jnp.maximum(sq_i + sq_j - 2.0 * gram, 0.0)              # (TI, N)

    we1 = we1_ref[...]                       # (2*DH + 1, E2)  E2 padded to 128
    e2 = we1.shape[1]
    w_q1 = we1[:dh].astype(cdt)
    w_k1 = we1[dh:2 * dh].astype(cdt)
    w_d = we1[2 * dh:2 * dh + 1]             # (1, E2), keep f32

    # Edge-MLP layer 1 hoisted out of the pairwise dim; be1 folded into qW.
    qW = (jnp.dot(q.reshape(h * ti, dh).astype(cdt), w_q1,
                  preferred_element_type=f32)
          + be1_ref[...]).reshape(h, ti, e2)
    kW = jnp.dot(k.reshape(h * n, dh).astype(cdt), w_k1,
                 preferred_element_type=f32).reshape(h, n, e2)

    h1 = (qW[:, :, None, :] + kW[:, None, :, :]
          + rel_dist[None, :, :, None] * w_d[None, None, :, :])
    h1 = jnp.maximum(h1, 0.0)                            # (H, TI, N, E2)

    m_ij = jnp.maximum(
        jnp.dot(h1.reshape(h * ti * n, e2).astype(cdt), we2_ref[...].astype(cdt),
                preferred_element_type=f32) + be2_ref[...],
        0.0)                                             # (H*TI*N, M)

    # Merged coors-MLP / attn-MLP: one (M,8M) matmul, one block-diag (8M,2).
    hid = jnp.maximum(
        jnp.dot(m_ij.astype(cdt), wca1_ref[...].astype(cdt),
                preferred_element_type=f32) + bca1_ref[...],
        0.0)                                             # (H*TI*N, 8M)
    two = (jnp.dot(hid.astype(cdt), wca2_ref[...].astype(cdt),
                   preferred_element_type=f32) + bca2_ref[...])  # (H*TI*N, 2)

    coor_w = two[:, 0:1].reshape(h, ti, n)
    sim = two[:, 1:2].reshape(h, ti, n)

    # softmax over j (stable)
    sim = sim - jnp.max(sim, axis=-1, keepdims=True)
    e = jnp.exp(sim)
    denom = jnp.sum(e, axis=-1, keepdims=True)
    if approx_recip:
        attn = e * pl.reciprocal(denom, approx=True)
    else:
        attn = e / denom

    # attention output, fused with to_out projection -> lane-dense (TI, DIM)
    wo = wo_ref[...]                                     # (H*DH, DIM)
    dim = wo.shape[1]
    feat = jnp.zeros((ti, dim), f32)
    for hh in range(h):                                  # static loop, H small
        o_h = jnp.dot(attn[hh].astype(cdt), v[hh].astype(cdt),
                      preferred_element_type=f32)        # (TI, DH)
        feat = feat + jnp.dot(o_h.astype(cdt),
                              wo[hh * dh:(hh + 1) * dh].astype(cdt),
                              preferred_element_type=f32)
    out_ref[0] = feat + bo_ref[...]

    # coors update: sum coor weights over heads, contract j against the
    # lane-dense basis (exact f32 VPU multiply + lane reduce) -> (3, TI).
    cw = jnp.sum(coor_w, axis=0)                                     # (TI, N)
    cout_ref[0, 0] = jnp.sum(basis * cw[None, :, :], axis=-1)        # (3, TI)


# --------------------------------- wrapper -----------------------------------

def prenorm_equivariant_attention(feats, coors, basis, params, *, heads,
                                  dim_head, ti=8, tn=8, precise=False):
    b, n, dim = feats.shape
    dh = dim_head
    inner = heads * dh
    assert n % ti == 0 and n % tn == 0
    cdt = jnp.float32 if precise else jnp.bfloat16

    # ---- one-time weight packing (wrapper side) ----
    # head-major qkv projection: slot s = (qkv index)*H + head
    w_qkv_r = params["w_qkv"].reshape(dim, 3, heads, dh)
    w_qkv_r = w_qkv_r.transpose(1, 2, 0, 3).reshape(3 * heads, dim, dh)

    # pad edge-MLP hidden width to 128 lanes (zero cols/rows -> same math)
    e_hidden = params["we1"].shape[1]
    pad = (-e_hidden) % 128
    we1 = jnp.pad(params["we1"], ((0, 0), (0, pad)))
    be1 = jnp.pad(params["be1"], ((0, 0), (0, pad)))
    we2 = jnp.pad(params["we2"], ((0, pad), (0, 0)))

    # merge coors_mlp and to_attn_mlp
    hidden = params["wc1"].shape[1]                      # 4 * m_dim
    wca1 = jnp.concatenate([params["wc1"], params["wa1"]], axis=1)   # (M, 8M)
    bca1 = jnp.concatenate([params["bc1"], params["ba1"]], axis=1)   # (1, 8M)
    z = jnp.zeros((hidden, 1), jnp.float32)
    wca2 = jnp.concatenate(
        [jnp.concatenate([params["wc2"], z], axis=1),
         jnp.concatenate([z, params["wa2"]], axis=1)], axis=0)       # (8M, 2)
    bca2 = jnp.concatenate([params["bc2"], params["ba2"]], axis=1)   # (1, 2)

    w_out = params["w_out"]                              # (inner, DIM)
    b_out = params["b_out"].reshape(1, dim)

    # ---- kernel 1: LayerNorm + to_qkv, head-major output (B, 3H, N, DH) ----
    qkv_h = pl.pallas_call(
        functools.partial(_ln_qkv_kernel, compute_dtype=cdt),
        grid=(b, n // tn),
        in_specs=[
            pl.BlockSpec((1, tn, dim), lambda bi, r: (bi, r, 0)),
            pl.BlockSpec((1, dim), lambda bi, r: (0, 0)),
            pl.BlockSpec((1, dim), lambda bi, r: (0, 0)),
            pl.BlockSpec((3 * heads, dim, dh), lambda bi, r: (0, 0, 0)),
        ],
        out_specs=pl.BlockSpec((1, 3 * heads, tn, dh),
                               lambda bi, r: (bi, 0, r, 0)),
        out_shape=jax.ShapeDtypeStruct((b, 3 * heads, n, dh), jnp.float32),
        compiler_params=pltpu.CompilerParams(
            dimension_semantics=("parallel", "parallel")),
    )(feats, params["ln_g"], params["ln_b"], w_qkv_r)

    # lane-dense layouts for the geometry inputs
    coors_t = coors.transpose(0, 2, 1)                   # (B, 3, N)
    basis_t = basis.transpose(0, 3, 1, 2)                # (B, 3, N, N)

    nt = n // ti
    wfull = lambda a: pl.BlockSpec(a.shape, lambda bi, it, nd=None, _a=a:
                                   (0,) * _a.ndim)

    # ---- kernel 2: equivariant attention, tiled over query rows ----
    out, coors_tiles = pl.pallas_call(
        functools.partial(_eq_attn_kernel, compute_dtype=cdt,
                          approx_recip=not precise),
        grid=(b, nt),
        in_specs=[
            # qkv_h passed three times with different head-group windows:
            pl.BlockSpec((1, heads, ti, dh), lambda bi, it: (bi, 0, it, 0)),  # q
            pl.BlockSpec((1, heads, n, dh), lambda bi, it: (bi, 1, 0, 0)),    # k
            pl.BlockSpec((1, heads, n, dh), lambda bi, it: (bi, 2, 0, 0)),    # v
            pl.BlockSpec((1, ti, 3), lambda bi, it: (bi, it, 0)),             # coors_i
            pl.BlockSpec((1, 3, n), lambda bi, it: (bi, 0, 0)),               # coors^T
            pl.BlockSpec((1, 3, ti, n), lambda bi, it: (bi, 0, it, 0)),       # basis^T
            wfull(we1), wfull(be1), wfull(we2), wfull(params["be2"]),
            wfull(wca1), wfull(bca1), wfull(wca2), wfull(bca2),
            wfull(w_out), wfull(b_out),
        ],
        out_specs=(
            pl.BlockSpec((1, ti, dim), lambda bi, it: (bi, it, 0)),      # feats
            pl.BlockSpec((1, 1, 3, ti), lambda bi, it: (bi, it, 0, 0)),  # coors
        ),
        out_shape=(
            jax.ShapeDtypeStruct((b, n, dim), jnp.float32),
            jax.ShapeDtypeStruct((b, nt, 3, ti), jnp.float32),
        ),
        compiler_params=pltpu.CompilerParams(
            dimension_semantics=("parallel", "parallel"),
            vmem_limit_bytes=32 * 1024 * 1024),   # safe on v5e/v6e/v7x
    )(qkv_h, qkv_h, qkv_h, coors, coors_t, basis_t,
      we1, be1, we2, params["be2"],
      wca1, bca1, wca2, bca2, w_out, b_out)

    coors_out = coors_tiles.transpose(0, 1, 3, 2).reshape(b, n, 3)
    return out, coors_out


# ------------------------ deterministic parameter init ----------------------

def init_params(key, *, dim, heads, dim_head, m_dim,
                edge_dim=0, fourier_features=0, init_eps=1e-3):
    inner = heads * dim_head
    e_in = fourier_features * 2 + dim_head * 2 + edge_dim + 1
    ks = jax.random.split(key, 18)
    nrm = lambda kk, shp, s: jax.random.normal(kk, shp, jnp.float32) * s
    return dict(
        ln_g=1.0 + nrm(ks[15], (1, dim), 1e-1),
        ln_b=nrm(ks[16], (1, dim), 1e-1),
        w_qkv=nrm(ks[0], (dim, inner * 3), init_eps),
        w_out=nrm(ks[1], (inner, dim), init_eps),
        b_out=nrm(ks[2], (dim,), 1e-2),
        we1=nrm(ks[3], (e_in, 2 * e_in), init_eps),
        be1=nrm(ks[4], (1, 2 * e_in), 1e-2),
        we2=nrm(ks[5], (2 * e_in, m_dim), init_eps),
        be2=nrm(ks[6], (1, m_dim), 1e-2),
        wa1=nrm(ks[7], (m_dim, 4 * m_dim), init_eps),
        ba1=nrm(ks[8], (1, 4 * m_dim), 1e-2),
        wa2=nrm(ks[9], (4 * m_dim, 1), init_eps),
        ba2=nrm(ks[10], (1, 1), 1e-2),
        wc1=nrm(ks[11], (m_dim, 4 * m_dim), init_eps),
        bc1=nrm(ks[12], (1, 4 * m_dim), 1e-2),
        wc2=nrm(ks[13], (4 * m_dim, 1), init_eps),
        bc2=nrm(ks[14], (1, 1), 1e-2),
    )


# ------------------------------ pure-JAX reference ---------------------------

def reference(feats, coors, basis, params, *, heads, dim_head):
    b, n, dim = feats.shape
    inner = heads * dim_head

    # PreNorm LayerNorm
    mu = feats.mean(-1, keepdims=True)
    var = ((feats - mu) ** 2).mean(-1, keepdims=True)
    feats = (feats - mu) / jnp.sqrt(var + 1e-5) * params["ln_g"] + params["ln_b"]

    qkv = feats @ params["w_qkv"]
    q, k, v = jnp.split(qkv, 3, axis=-1)
    to_heads = lambda t: t.reshape(b, n, heads, dim_head).transpose(0, 2, 1, 3)
    q, k, v = map(to_heads, (q, k, v))

    rel = coors[:, :, None, :] - coors[:, None, :, :]
    rel_dist = jnp.sum(rel ** 2, axis=-1, keepdims=True)               # (b,n,n,1)
    rel_dist_h = jnp.broadcast_to(rel_dist[:, None], (b, heads, n, n, 1))
    q_e = jnp.broadcast_to(q[:, :, :, None, :], (b, heads, n, n, dim_head))
    k_e = jnp.broadcast_to(k[:, :, None, :, :], (b, heads, n, n, dim_head))
    edge_in = jnp.concatenate([q_e, k_e, rel_dist_h], axis=-1)

    h1 = jax.nn.relu(edge_in @ params["we1"] + params["be1"])
    m_ij = jax.nn.relu(h1 @ params["we2"] + params["be2"])

    ch = jax.nn.relu(m_ij @ params["wc1"] + params["bc1"])
    coor_w = (ch @ params["wc2"] + params["bc2"])[..., 0]              # (b,h,n,n)
    coors_out = jnp.einsum("bhij,bijc->bic", coor_w, basis)

    ah = jax.nn.relu(m_ij @ params["wa1"] + params["ba1"])
    sim = (ah @ params["wa2"] + params["ba2"])[..., 0]
    attn = jax.nn.softmax(sim, axis=-1)
    out = jnp.einsum("bhij,bhjd->bhid", attn, v)
    out = out.transpose(0, 2, 1, 3).reshape(b, n, inner)
    out = out @ params["w_out"] + params["b_out"]
    return out, coors_out


# ---------------------------------- main -------------------------------------

if __name__ == "__main__":
    B, N, DIM = 2, 16, 32
    HEADS, DIM_HEAD, M_DIM = 4, 16, 16
    TI, TN = 8, 8            # row tiles (N=16 -> 2 i-tiles exercises the grid)

    key = jax.random.PRNGKey(0)
    kf, kc, kb, kp = jax.random.split(key, 4)
    feats = jax.random.normal(kf, (B, N, DIM), jnp.float32)
    coors = jax.random.normal(kc, (B, N, 3), jnp.float32)
    basis = jax.random.normal(kb, (B, N, N, 3), jnp.float32)
    params = init_params(kp, dim=DIM, heads=HEADS, dim_head=DIM_HEAD, m_dim=M_DIM)

    # exact-precision reference (ground truth)
    with jax.default_matmul_precision("float32"):
        ref_out, ref_coors = reference(
            feats, coors, basis, params, heads=HEADS, dim_head=DIM_HEAD)
        ref_out, ref_coors = jax.block_until_ready((ref_out, ref_coors))

    # precise (f32 MXU, exact softmax divide) path -> tight tolerance
    out, coors_out = prenorm_equivariant_attention(
        feats, coors, basis, params, heads=HEADS, dim_head=DIM_HEAD,
        ti=TI, tn=TN, precise=True)
    jax.block_until_ready((out, coors_out))
    assert out.shape == (B, N, DIM) and coors_out.shape == (B, N, 3)
    assert jnp.allclose(out, ref_out, atol=2e-4, rtol=1e-3), "feature mismatch (f32)"
    assert jnp.allclose(coors_out, ref_coors, atol=2e-4, rtol=1e-3), "coors mismatch (f32)"

    # fast path (bf16 MXU operands + approx reciprocal) -> production config
    out_f, coors_f = prenorm_equivariant_attention(
        feats, coors, basis, params, heads=HEADS, dim_head=DIM_HEAD,
        ti=TI, tn=TN, precise=False)
    jax.block_until_ready((out_f, coors_f))
    assert jnp.allclose(out_f, ref_out, atol=3e-3, rtol=1e-2), "feature mismatch (bf16)"
    assert jnp.allclose(coors_f, ref_coors, atol=3e-3, rtol=1e-2), "coors mismatch (bf16)"

    print("KERNEL_OK")
</pallas_src>

<mosaic_0001>
module attributes {stable_mosaic.version = 11 : i64} {
  func.func @_ln_qkv_kernel(%arg0: i32, %arg1: i32, %arg2: memref<1x8x32xf32, #tpu.memory_space<vmem>>, %arg3: memref<1x32xf32, #tpu.memory_space<vmem>>, %arg4: memref<1x32xf32, #tpu.memory_space<vmem>>, %arg5: memref<12x32x16xf32, #tpu.memory_space<vmem>>, %arg6: memref<1x12x8x16xf32, #tpu.memory_space<vmem>>) attributes {dimension_semantics = [#tpu.dimension_semantics<parallel>, #tpu.dimension_semantics<parallel>], iteration_bounds = array<i64: 2, 2>, scalar_prefetch = 0 : i64, scratch_operands = 0 : i64, tpu.core_type = #tpu.core_type<tc>, window_params = [{transform_indices = @transform_0, window_bounds = array<i64: 1, 8, 32>}, {pipeline_mode = #tpu.pipeline_mode<synchronous>, transform_indices = @transform_1, window_bounds = array<i64: 1, 32>}, {pipeline_mode = #tpu.pipeline_mode<synchronous>, transform_indices = @transform_2, window_bounds = array<i64: 1, 32>}, {pipeline_mode = #tpu.pipeline_mode<synchronous>, transform_indices = @transform_3, window_bounds = array<i64: 12, 32, 16>}, {transform_indices = @transform_4, window_bounds = array<i64: 1, 12, 8, 16>}]} {
    %c0 = arith.constant 0 : index
    %c0_0 = arith.constant 0 : index
    %c0_1 = arith.constant 0 : index
    %0 = vector.load %arg2[%c0, %c0_0, %c0_1] : memref<1x8x32xf32, #tpu.memory_space<vmem>>, vector<1x8x32xf32>
    %1 = vector.shape_cast %0 : vector<1x8x32xf32> to vector<8x32xf32>
    %cst = arith.constant dense<0.000000e+00> : vector<8xf32>
    %2 = vector.multi_reduction <add>, %1, %cst [1] : vector<8x32xf32> to vector<8xf32>
    %3 = vector.shape_cast %2 : vector<8xf32> to vector<8x1xf32>
    %cst_2 = arith.constant 3.200000e+01 : f32
    %4 = vector.broadcast %cst_2 : f32 to vector<8x1xf32>
    %5 = arith.divf %3, %4 : vector<8x1xf32>
    %6 = vector.broadcast %5 : vector<8x1xf32> to vector<8x32xf32>
    %7 = arith.subf %1, %6 : vector<8x32xf32>
    %8 = arith.mulf %7, %7 : vector<8x32xf32>
    %cst_3 = arith.constant dense<0.000000e+00> : vector<8xf32>
    %9 = vector.multi_reduction <add>, %8, %cst_3 [1] : vector<8x32xf32> to vector<8xf32>
    %10 = vector.shape_cast %9 : vector<8xf32> to vector<8x1xf32>
    %cst_4 = arith.constant 3.200000e+01 : f32
    %11 = vector.broadcast %cst_4 : f32 to vector<8x1xf32>
    %12 = arith.divf %10, %11 : vector<8x1xf32>
    %cst_5 = arith.constant 9.99999974E-6 : f32
    %13 = vector.broadcast %cst_5 : f32 to vector<8x1xf32>
    %14 = arith.addf %12, %13 : vector<8x1xf32>
    %15 = math.rsqrt %14 : vector<8x1xf32>
    %16 = vector.broadcast %15 : vector<8x1xf32> to vector<8x32xf32>
    %17 = arith.mulf %7, %16 : vector<8x32xf32>
    %c0_6 = arith.constant 0 : index
    %c0_7 = arith.constant 0 : index
    %18 = vector.load %arg3[%c0_6, %c0_7] : memref<1x32xf32, #tpu.memory_space<vmem>>, vector<1x32xf32>
    %19 = vector.broadcast %18 : vector<1x32xf32> to vector<8x32xf32>
    %20 = arith.mulf %17, %19 : vector<8x32xf32>
    %c0_8 = arith.constant 0 : index
    %c0_9 = arith.constant 0 : index
    %21 = vector.load %arg4[%c0_8, %c0_9] : memref<1x32xf32, #tpu.memory_space<vmem>>, vector<1x32xf32>
    %22 = vector.broadcast %21 : vector<1x32xf32> to vector<8x32xf32>
    %23 = arith.addf %20, %22 : vector<8x32xf32>
    %c0_10 = arith.constant 0 : index
    %c0_11 = arith.constant 0 : index
    %c0_12 = arith.constant 0 : index
    %24 = vector.load %arg5[%c0_10, %c0_11, %c0_12] : memref<12x32x16xf32, #tpu.memory_space<vmem>>, vector<12x32x16xf32>
    %25 = vector.extract_strided_slice %24 {offsets = [0, 0, 0], sizes = [1, 32, 16], strides = [1, 1, 1]} : vector<12x32x16xf32> to vector<1x32x16xf32>
    %26 = vector.shape_cast %25 : vector<1x32x16xf32> to vector<32x16xf32>
    %cst_13 = arith.constant dense<0.000000e+00> : vector<8x16xf32>
    %27 = tpu.matmul %23, %26, %cst_13 {dimension_numbers = #tpu.dot_dimension_numbers<[1], [0], [0], [1], [0, 0, 1, 1], [], []>} : vector<8x32xf32>, vector<32x16xf32>, vector<8x16xf32> -> vector<8x16xf32>
    %c0_14 = arith.constant 0 : index
    %c0_15 = arith.constant 0 : index
    %c0_16 = arith.constant 0 : index
    %c0_17 = arith.constant 0 : index
    %28 = vector.load %arg6[%c0_14, %c0_15, %c0_16, %c0_17] : memref<1x12x8x16xf32, #tpu.memory_space<vmem>>, vector<1x1x8x16xf32>
    %29 = vector.shape_cast %28 : vector<1x1x8x16xf32> to vector<8x16xf32>
    %30 = vector.shape_cast %27 : vector<8x16xf32> to vector<1x1x8x16xf32>
    tpu.vector_store %arg6[%c0_14, %c0_15, %c0_16, %c0_17], %30 {strides = array<i32>} : memref<1x12x8x16xf32, #tpu.memory_space<vmem>>, vector<1x1x8x16xf32>,
    %31 = vector.extract_strided_slice %24 {offsets = [1, 0, 0], sizes = [1, 32, 16], strides = [1, 1, 1]} : vector<12x32x16xf32> to vector<1x32x16xf32>
    %32 = vector.shape_cast %31 : vector<1x32x16xf32> to vector<32x16xf32>
    %cst_18 = arith.constant dense<0.000000e+00> : vector<8x16xf32>
    %33 = tpu.matmul %23, %32, %cst_18 {dimension_numbers = #tpu.dot_dimension_numbers<[1], [0], [0], [1], [0, 0, 1, 1], [], []>} : vector<8x32xf32>, vector<32x16xf32>, vector<8x16xf32> -> vector<8x16xf32>
    %c0_19 = arith.constant 0 : index
    %c1 = arith.constant 1 : index
    %c0_20 = arith.constant 0 : index
    %c0_21 = arith.constant 0 : index
    %34 = vector.load %arg6[%c0_19, %c1, %c0_20, %c0_21] : memref<1x12x8x16xf32, #tpu.memory_space<vmem>>, vector<1x1x8x16xf32>
    %35 = vector.shape_cast %34 : vector<1x1x8x16xf32> to vector<8x16xf32>
    %36 = vector.shape_cast %33 : vector<8x16xf32> to vector<1x1x8x16xf32>
    tpu.vector_store %arg6[%c0_19, %c1, %c0_20, %c0_21], %36 {strides = array<i32>} : memref<1x12x8x16xf32, #tpu.memory_space<vmem>>, vector<1x1x8x16xf32>,
    %37 = vector.extract_strided_slice %24 {offsets = [2, 0, 0], sizes = [1, 32, 16], strides = [1, 1, 1]} : vector<12x32x16xf32> to vector<1x32x16xf32>
    %38 = vector.shape_cast %37 : vector<1x32x16xf32> to vector<32x16xf32>
    %cst_22 = arith.constant dense<0.000000e+00> : vector<8x16xf32>
    %39 = tpu.matmul %23, %38, %cst_22 {dimension_numbers = #tpu.dot_dimension_numbers<[1], [0], [0], [1], [0, 0, 1, 1], [], []>} : vector<8x32xf32>, vector<32x16xf32>, vector<8x16xf32> -> vector<8x16xf32>
    %c0_23 = arith.constant 0 : index
    %c2 = arith.constant 2 : index
    %c0_24 = arith.constant 0 : index
    %c0_25 = arith.constant 0 : index
    %40 = vector.load %arg6[%c0_23, %c2, %c0_24, %c0_25] : memref<1x12x8x16xf32, #tpu.memory_space<vmem>>, vector<1x1x8x16xf32>
    %41 = vector.shape_cast %40 : vector<1x1x8x16xf32> to vector<8x16xf32>
    %42 = vector.shape_cast %39 : vector<8x16xf32> to vector<1x1x8x16xf32>
    tpu.vector_store %arg6[%c0_23, %c2, %c0_24, %c0_25], %42 {strides = array<i32>} : memref<1x12x8x16xf32, #tpu.memory_space<vmem>>, vector<1x1x8x16xf32>,
    %43 = vector.extract_strided_slice %24 {offsets = [3, 0, 0], sizes = [1, 32, 16], strides = [1, 1, 1]} : vector<12x32x16xf32> to vector<1x32x16xf32>
    %44 = vector.shape_cast %43 : vector<1x32x16xf32> to vector<32x16xf32>
    %cst_26 = arith.constant dense<0.000000e+00> : vector<8x16xf32>
    %45 = tpu.matmul %23, %44, %cst_26 {dimension_numbers = #tpu.dot_dimension_numbers<[1], [0], [0], [1], [0, 0, 1, 1], [], []>} : vector<8x32xf32>, vector<32x16xf32>, vector<8x16xf32> -> vector<8x16xf32>
    %c0_27 = arith.constant 0 : index
    %c3 = arith.constant 3 : index
    %c0_28 = arith.constant 0 : index
    %c0_29 = arith.constant 0 : index
    %46 = vector.load %arg6[%c0_27, %c3, %c0_28, %c0_29] : memref<1x12x8x16xf32, #tpu.memory_space<vmem>>, vector<1x1x8x16xf32>
    %47 = vector.shape_cast %46 : vector<1x1x8x16xf32> to vector<8x16xf32>
    %48 = vector.shape_cast %45 : vector<8x16xf32> to vector<1x1x8x16xf32>
    tpu.vector_store %arg6[%c0_27, %c3, %c0_28, %c0_29], %48 {strides = array<i32>} : memref<1x12x8x16xf32, #tpu.memory_space<vmem>>, vector<1x1x8x16xf32>,
    %49 = vector.extract_strided_slice %24 {offsets = [4, 0, 0], sizes = [1, 32, 16], strides = [1, 1, 1]} : vector<12x32x16xf32> to vector<1x32x16xf32>
    %50 = vector.shape_cast %49 : vector<1x32x16xf32> to vector<32x16xf32>
    %cst_30 = arith.constant dense<0.000000e+00> : vector<8x16xf32>
    %51 = tpu.matmul %23, %50, %cst_30 {dimension_numbers = #tpu.dot_dimension_numbers<[1], [0], [0], [1], [0, 0, 1, 1], [], []>} : vector<8x32xf32>, vector<32x16xf32>, vector<8x16xf32> -> vector<8x16xf32>
    %c0_31 = arith.constant 0 : index
    %c4 = arith.constant 4 : index
    %c0_32 = arith.constant 0 : index
    %c0_33 = arith.constant 0 : index
    %52 = vector.load %arg6[%c0_31, %c4, %c0_32, %c0_33] : memref<1x12x8x16xf32, #tpu.memory_space<vmem>>, vector<1x1x8x16xf32>
    %53 = vector.shape_cast %52 : vector<1x1x8x16xf32> to vector<8x16xf32>
    %54 = vector.shape_cast %51 : vector<8x16xf32> to vector<1x1x8x16xf32>
    tpu.vector_store %arg6[%c0_31, %c4, %c0_32, %c0_33], %54 {strides = array<i32>} : memref<1x12x8x16xf32, #tpu.memory_space<vmem>>, vector<1x1x8x16xf32>,
    %55 = vector.extract_strided_slice %24 {offsets = [5, 0, 0], sizes = [1, 32, 16], strides = [1, 1, 1]} : vector<12x32x16xf32> to vector<1x32x16xf32>
    %56 = vector.shape_cast %55 : vector<1x32x16xf32> to vector<32x16xf32>
    %cst_34 = arith.constant dense<0.000000e+00> : vector<8x16xf32>
    %57 = tpu.matmul %23, %56, %cst_34 {dimension_numbers = #tpu.dot_dimension_numbers<[1], [0], [0], [1], [0, 0, 1, 1], [], []>} : vector<8x32xf32>, vector<32x16xf32>, vector<8x16xf32> -> vector<8x16xf32>
    %c0_35 = arith.constant 0 : index
    %c5 = arith.constant 5 : index
    %c0_36 = arith.constant 0 : index
    %c0_37 = arith.constant 0 : index
    %58 = vector.load %arg6[%c0_35, %c5, %c0_36, %c0_37] : memref<1x12x8x16xf32, #tpu.memory_space<vmem>>, vector<1x1x8x16xf32>
    %59 = vector.shape_cast %58 : vector<1x1x8x16xf32> to vector<8x16xf32>
    %60 = vector.shape_cast %57 : vector<8x16xf32> to vector<1x1x8x16xf32>
    tpu.vector_store %arg6[%c0_35, %c5, %c0_36, %c0_37], %60 {strides = array<i32>} : memref<1x12x8x16xf32, #tpu.memory_space<vmem>>, vector<1x1x8x16xf32>,
    %61 = vector.extract_strided_slice %24 {offsets = [6, 0, 0], sizes = [1, 32, 16], strides = [1, 1, 1]} : vector<12x32x16xf32> to vector<1x32x16xf32>
    %62 = vector.shape_cast %61 : vector<1x32x16xf32> to vector<32x16xf32>
    %cst_38 = arith.constant dense<0.000000e+00> : vector<8x16xf32>
    %63 = tpu.matmul %23, %62, %cst_38 {dimension_numbers = #tpu.dot_dimension_numbers<[1], [0], [0], [1], [0, 0, 1, 1], [], []>} : vector<8x32xf32>, vector<32x16xf32>, vector<8x16xf32> -> vector<8x16xf32>
    %c0_39 = arith.constant 0 : index
    %c6 = arith.constant 6 : index
    %c0_40 = arith.constant 0 : index
    %c0_41 = arith.constant 0 : index
    %64 = vector.load %arg6[%c0_39, %c6, %c0_40, %c0_41] : memref<1x12x8x16xf32, #tpu.memory_space<vmem>>, vector<1x1x8x16xf32>
    %65 = vector.shape_cast %64 : vector<1x1x8x16xf32> to vector<8x16xf32>
    %66 = vector.shape_cast %63 : vector<8x16xf32> to vector<1x1x8x16xf32>
    tpu.vector_store %arg6[%c0_39, %c6, %c0_40, %c0_41], %66 {strides = array<i32>} : memref<1x12x8x16xf32, #tpu.memory_space<vmem>>, vector<1x1x8x16xf32>,
    %67 = vector.extract_strided_slice %24 {offsets = [7, 0, 0], sizes = [1, 32, 16], strides = [1, 1, 1]} : vector<12x32x16xf32> to vector<1x32x16xf32>
    %68 = vector.shape_cast %67 : vector<1x32x16xf32> to vector<32x16xf32>
    %cst_42 = arith.constant dense<0.000000e+00> : vector<8x16xf32>
    %69 = tpu.matmul %23, %68, %cst_42 {dimension_numbers = #tpu.dot_dimension_numbers<[1], [0], [0], [1], [0, 0, 1, 1], [], []>} : vector<8x32xf32>, vector<32x16xf32>, vector<8x16xf32> -> vector<8x16xf32>
    %c0_43 = arith.constant 0 : index
    %c7 = arith.constant 7 : index
    %c0_44 = arith.constant 0 : index
    %c0_45 = arith.constant 0 : index
    %70 = vector.load %arg6[%c0_43, %c7, %c0_44, %c0_45] : memref<1x12x8x16xf32, #tpu.memory_space<vmem>>, vector<1x1x8x16xf32>
    %71 = vector.shape_cast %70 : vector<1x1x8x16xf32> to vector<8x16xf32>
    %72 = vector.shape_cast %69 : vector<8x16xf32> to vector<1x1x8x16xf32>
    tpu.vector_store %arg6[%c0_43, %c7, %c0_44, %c0_45], %72 {strides = array<i32>} : memref<1x12x8x16xf32, #tpu.memory_space<vmem>>, vector<1x1x8x16xf32>,
    %73 = vector.extract_strided_slice %24 {offsets = [8, 0, 0], sizes = [1, 32, 16], strides = [1, 1, 1]} : vector<12x32x16xf32> to vector<1x32x16xf32>
    %74 = vector.shape_cast %73 : vector<1x32x16xf32> to vector<32x16xf32>
    %cst_46 = arith.constant dense<0.000000e+00> : vector<8x16xf32>
    %75 = tpu.matmul %23, %74, %cst_46 {dimension_numbers = #tpu.dot_dimension_numbers<[1], [0], [0], [1], [0, 0, 1, 1], [], []>} : vector<8x32xf32>, vector<32x16xf32>, vector<8x16xf32> -> vector<8x16xf32>
    %c0_47 = arith.constant 0 : index
    %c8 = arith.constant 8 : index
    %c0_48 = arith.constant 0 : index
    %c0_49 = arith.constant 0 : index
    %76 = vector.load %arg6[%c0_47, %c8, %c0_48, %c0_49] : memref<1x12x8x16xf32, #tpu.memory_space<vmem>>, vector<1x1x8x16xf32>
    %77 = vector.shape_cast %76 : vector<1x1x8x16xf32> to vector<8x16xf32>
    %78 = vector.shape_cast %75 : vector<8x16xf32> to vector<1x1x8x16xf32>
    tpu.vector_store %arg6[%c0_47, %c8, %c0_48, %c0_49], %78 {strides = array<i32>} : memref<1x12x8x16xf32, #tpu.memory_space<vmem>>, vector<1x1x8x16xf32>,
    %79 = vector.extract_strided_slice %24 {offsets = [9, 0, 0], sizes = [1, 32, 16], strides = [1, 1, 1]} : vector<12x32x16xf32> to vector<1x32x16xf32>
    %80 = vector.shape_cast %79 : vector<1x32x16xf32> to vector<32x16xf32>
    %cst_50 = arith.constant dense<0.000000e+00> : vector<8x16xf32>
    %81 = tpu.matmul %23, %80, %cst_50 {dimension_numbers = #tpu.dot_dimension_numbers<[1], [0], [0], [1], [0, 0, 1, 1], [], []>} : vector<8x32xf32>, vector<32x16xf32>, vector<8x16xf32> -> vector<8x16xf32>
    %c0_51 = arith.constant 0 : index
    %c9 = arith.constant 9 : index
    %c0_52 = arith.constant 0 : index
    %c0_53 = arith.constant 0 : index
    %82 = vector.load %arg6[%c0_51, %c9, %c0_52, %c0_53] : memref<1x12x8x16xf32, #tpu.memory_space<vmem>>, vector<1x1x8x16xf32>
    %83 = vector.shape_cast %82 : vector<1x1x8x16xf32> to vector<8x16xf32>
    %84 = vector.shape_cast %81 : vector<8x16xf32> to vector<1x1x8x16xf32>
    tpu.vector_store %arg6[%c0_51, %c9, %c0_52, %c0_53], %84 {strides = array<i32>} : memref<1x12x8x16xf32, #tpu.memory_space<vmem>>, vector<1x1x8x16xf32>,
    %85 = vector.extract_strided_slice %24 {offsets = [10, 0, 0], sizes = [1, 32, 16], strides = [1, 1, 1]} : vector<12x32x16xf32> to vector<1x32x16xf32>
    %86 = vector.shape_cast %85 : vector<1x32x16xf32> to vector<32x16xf32>
    %cst_54 = arith.constant dense<0.000000e+00> : vector<8x16xf32>
    %87 = tpu.matmul %23, %86, %cst_54 {dimension_numbers = #tpu.dot_dimension_numbers<[1], [0], [0], [1], [0, 0, 1, 1], [], []>} : vector<8x32xf32>, vector<32x16xf32>, vector<8x16xf32> -> vector<8x16xf32>
    %c0_55 = arith.constant 0 : index
    %c10 = arith.constant 10 : index
    %c0_56 = arith.constant 0 : index
    %c0_57 = arith.constant 0 : index
    %88 = vector.load %arg6[%c0_55, %c10, %c0_56, %c0_57] : memref<1x12x8x16xf32, #tpu.memory_space<vmem>>, vector<1x1x8x16xf32>
    %89 = vector.shape_cast %88 : vector<1x1x8x16xf32> to vector<8x16xf32>
    %90 = vector.shape_cast %87 : vector<8x16xf32> to vector<1x1x8x16xf32>
    tpu.vector_store %arg6[%c0_55, %c10, %c0_56, %c0_57], %90 {strides = array<i32>} : memref<1x12x8x16xf32, #tpu.memory_space<vmem>>, vector<1x1x8x16xf32>,
    %91 = vector.extract_strided_slice %24 {offsets = [11, 0, 0], sizes = [1, 32, 16], strides = [1, 1, 1]} : vector<12x32x16xf32> to vector<1x32x16xf32>
    %92 = vector.shape_cast %91 : vector<1x32x16xf32> to vector<32x16xf32>
    %cst_58 = arith.constant dense<0.000000e+00> : vector<8x16xf32>
    %93 = tpu.matmul %23, %92, %cst_58 {dimension_numbers = #tpu.dot_dimension_numbers<[1], [0], [0], [1], [0, 0, 1, 1], [], []>} : vector<8x32xf32>, vector<32x16xf32>, vector<8x16xf32> -> vector<8x16xf32>
    %c0_59 = arith.constant 0 : index
    %c11 = arith.constant 11 : index
    %c0_60 = arith.constant 0 : index
    %c0_61 = arith.constant 0 : index
    %94 = vector.load %arg6[%c0_59, %c11, %c0_60, %c0_61] : memref<1x12x8x16xf32, #tpu.memory_space<vmem>>, vector<1x1x8x16xf32>
    %95 = vector.shape_cast %94 : vector<1x1x8x16xf32> to vector<8x16xf32>
    %96 = vector.shape_cast %93 : vector<8x16xf32> to vector<1x1x8x16xf32>
    tpu.vector_store %arg6[%c0_59, %c11, %c0_60, %c0_61], %96 {strides = array<i32>} : memref<1x12x8x16xf32, #tpu.memory_space<vmem>>, vector<1x1x8x16xf32>,
    return
  }
  func.func @transform_0(%arg0: i32, %arg1: i32) -> (i32, i32, i32) {
    %c0_i32 = arith.constant 0 : i32
    %c0_i32_0 = arith.constant 0 : i32
    return %arg0, %arg1, %c0_i32 : i32, i32, i32
  }
  func.func @transform_1(%arg0: i32, %arg1: i32) -> (i32, i32) {
    %c0_i32 = arith.constant 0 : i32
    %c0_i32_0 = arith.constant 0 : i32
    %c0_i32_1 = arith.constant 0 : i32
    return %c0_i32, %c0_i32_0 : i32, i32
  }
  func.func @transform_2(%arg0: i32, %arg1: i32) -> (i32, i32) {
    %c0_i32 = arith.constant 0 : i32
    %c0_i32_0 = arith.constant 0 : i32
    %c0_i32_1 = arith.constant 0 : i32
    return %c0_i32, %c0_i32_0 : i32, i32
  }
  func.func @transform_3(%arg0: i32, %arg1: i32) -> (i32, i32, i32) {
    %c0_i32 = arith.constant 0 : i32
    %c0_i32_0 = arith.constant 0 : i32
    %c0_i32_1 = arith.constant 0 : i32
    %c0_i32_2 = arith.constant 0 : i32
    return %c0_i32, %c0_i32_0, %c0_i32_1 : i32, i32, i32
  }
  func.func @transform_4(%arg0: i32, %arg1: i32) -> (i32, i32, i32, i32) {
    %c0_i32 = arith.constant 0 : i32
    %c0_i32_0 = arith.constant 0 : i32
    %c0_i32_1 = arith.constant 0 : i32
    return %arg0, %c0_i32, %arg1, %c0_i32_0 : i32, i32, i32, i32
  }
}

</mosaic_0001>

<bundles_post_ra>
// kernel: tpu_custom_call.1
= control target key start
LH: loop header
LB: loop body
LE: loop exit
PB: predicated region body
PF: predicated region fallthrough
CT: control target
= control target key end

     0   :  { %9 = vsyncpa [#allocation3], 0  ;;  %s2116_s0 = inlined_call_operand.vmem [shape: f32[2,16,32], index: 0, kind: input, shape index: {}]   ;;  %s2117_s1 = inlined_call_operand.vmem [shape: f32[1,32], index: 1, kind: input, shape index: {}]   ;;  %s2118_s2 = inlined_call_operand.vmem [shape: f32[1,32], index: 2, kind: input, shape index: {}]   ;;  %s2119_s3 = inlined_call_operand.vmem [shape: f32[12,32,16], index: 3, kind: input, shape index: {}]   ;;  %s2120_s4 = inlined_call_operand.hbm [shape: f32[2,12,16,16], index: 4, kind: output, shape index: {}]  }
   0x1   :  { %11 = vsyncpa [#allocation3 + $0x1], 0  ;;  %s1696_s15 = smov 0   ;;  %s1698_s16 = smov 0  }
   0x2   :  { %s1700_s17 = smov 0   ;;  %s1702_s18 = smov 0  }
   0x3   :  { %s1704_s19 = smov 0   ;;  %s1706_s20 = smov 0  }
   0x4   :  { %s1708_s21 = smov 0   ;;  %s1710_s22 = smov 0  }
   0x5 LB: > { %s1264_s23 = sadd.s32 4294967295, %s1663_s22   ;;  %s1265_s24 = sadd.s32 4294967294, %s1663_s22   ;;  %s1663_s22 = sphi %s1710_s22, %s17_s22   ;;  %s1659_s21 = sphi %s1708_s21, %s2129_s21   ;;  %s1655_s20 = sphi %s1706_s20, %s2128_s20   ;;  %s1651_s19 = sphi %s1704_s19, %s2127_s19   ;;  %s1647_s18 = sphi %s1702_s18, %s2126_s18   ;;  %s1643_s17 = sphi %s1700_s17, %s2125_s17   ;;  %s1639_s16 = sphi %s1698_s16, %s2124_s16   ;;  %s1635_s15 = sphi %s1696_s15, %s2123_s15  }
   0x6   : > { %s26_s25 = sadd.s32 1, %s1655_s20  ;;  %s29_s26 = sadd.s32 1, %s1659_s21 }
   0x7   : > { %p27_p0 = scmp.ge.s32.totalorder %s26_s25, 2  ;;  %p139_p1 = scmp.ne.s32.totalorder %s1643_s17, %s1639_s16 }
   0x8   : > { %p140_p2 = scmp.eq.s32.totalorder %s1264_s23, 3  ;;  %p145_p5 = scmp.ne.s32.totalorder %s1639_s16, %s1635_s15 }
   0x9   : > { %s2131_s25 = smov (%p27_p0, %s26_s25), 0  ;;  %s2133_s26 = smov (!%p27_p0, %s29_s26), %s1659_s21 }
   0xa   : > { %s125_s27 = ssub.s32 %s1655_s20, %s2131_s25  ;;  %p1747_p3 = por %p140_p2, %p139_p1 }
   0xb   : > { %p31_p4 = scmp.ge.s32.totalorder %s2133_s26, 2  ;;  %p146_p6 = scmp.eq.s32.totalorder %s1265_s24, 3 }
   0xc   : > { %p1268_p7 = scmp.ge.s32.totalorder %s1663_s22, 1  ;;  %p184_p9 = scmp.lt.s32.totalorder %s1663_s22, 5 }
   0xd   : > { %s2135_s26 = smov (%p31_p4, %s2133_s26), 0  ;;  %p1756_p8 = por %p146_p6, %p145_p5 }
   0xe   : > { %s124_s30 = ssub.s32 %s1659_s21, %s2135_s26  ;;  %s129_s5 = sadd.s32 1, %s1643_s17 }
   0xf   : > { %s126_s6 = sor.u32 %s125_s27, %s124_s30  ;;  %p185_p10 = pnand %p1268_p7, %p184_p9 }
  0x10   : > { %p127_p11 = scmp.eq.s32.totalorder %s126_s6, 0  ;;  %p213_p12 = scmp.lt.s32.totalorder (!%p185_p10), %s1651_s19, 1 }
  0x11   : > { %188 = sbr.rel (%p185_p10) target bundleno = 595 (0x253), region = 36  ;;  %p215_p13 = scmp.lt.s32.totalorder (!%p185_p10), %s1647_s18, 1 }
  0x12   : > { %s1765_s7 = scalar_select %p127_p11, %s1643_s17, %s129_s5  }
  0x16   : > { %s214_s8 = scalar_select %p213_p12, %s1651_s19, 1  ;;  %vm222_vm0 = vcmask 261120   ;;  %v1665_v7 = vmov 0.0   ;;  %v256_v8 = vld [vmem:[%s2119_s3 + $0x18] sm:$0xff]  ;;  %v255_v10 = vld [vmem:[%s2119_s3 + $0x10] sm:$0xff]  ;;  %v254_v12 = vld [vmem:[%s2119_s3 + $0x8] sm:$0xff] }
  0x17   : > { %s216_s9 = scalar_select %p215_p13, %s1647_s18, 1  ;;  %1359 = vmatprep.subr.mxu0 %v1665_v7  ;;  %1370 = vmatprep.subr.mxu1 %v1665_v7  ;;  %v260_v9 = vld [vmem:[%s2119_s3 + $0x38] sm:$0xff]  ;;  %v259_v11 = vld [vmem:[%s2119_s3 + $0x30] sm:$0xff]  ;;  %v258_v13 = vld [vmem:[%s2119_s3 + $0x28] sm:$0xff]  ;;  %vm1666_vm1 = vmmov 0   ;;  %vm374_vm2 = vcmask 130048  }
  0x18   : > { %s1269_s10 = sshll.u32 %s214_s8, 1  ;;  %1360 = vmatpush3.msra.mxu0 %v256_v8  ;;  %1371 = vmatpush3.msra.mxu1 %v260_v9  ;;  %v253_v14 = vld [vmem:[%s2119_s3] sm:$0xff]  ;;  %v264_v25 = vld [vmem:[%s2119_s3 + $0x58] sm:$0xff]  ;;  %v263_v27 = vld [vmem:[%s2119_s3 + $0x50] sm:$0xff] }
  0x19   : > { %s218_s11 = sadd.s32 %s1269_s10, %s216_s9  ;;  %1361 = vmatprep.subr.mxu0 %v1665_v7  ;;  %1372 = vmatprep.subr.mxu1 %v1665_v7  ;;  %v257_v15 = vld [vmem:[%s2119_s3 + $0x20] sm:$0xff]  ;;  %v268_v26 = vld [vmem:[%s2119_s3 + $0x78] sm:$0xff]  ;;  %v267_v28 = vld [vmem:[%s2119_s3 + $0x70] sm:$0xff]  ;;  %s1667_s9 = smov [#allocation2]  }
  0x1a   : > { %s1270_s12 = sshll.u32 %s218_s11, 3  ;;  %1362 = vmatpush3.msra.mxu0 %v255_v10  ;;  %1373 = vmatpush3.msra.mxu1 %v259_v11  ;;  %v1271_v20 = vld [vmem:[%s2117_s1] ss:$0 sm:$0xff]  ;;  %v262_v29 = vld [vmem:[%s2119_s3 + $0x48] sm:$0xff]  ;;  %v272_v33 = vld [vmem:[%s2119_s3 + $0x98] sm:$0xff]  ;;  %s1575_s10 = sshll.u32 %s1667_s9, 4  ;;  %s1576_s10 = int_to_ptr.vmem [resolvable:$false] %s1575_s10 }
  0x1b   : > { %s220_s23 = scalar_lea.vmem %s2116_s0, %s1270_s12  ;;  %1363 = vmatprep.subr.mxu0 %v1665_v7  ;;  %1374 = vmatprep.subr.mxu1 %v1665_v7  ;;  %v1272_v22 = vld [vmem:[%s2118_s2] ss:$0 sm:$0xff]  ;;  %v266_v30 = vld [vmem:[%s2119_s3 + $0x68] sm:$0xff]  ;;  %v276_v34 = vld [vmem:[%s2119_s3 + $0xb8] sm:$0xff]  ;;  %s210_s12 = sand.u32 1, %s1639_s16  }
  0x1c   : > { %v221_v0 = vld [vmem:[%s220_s23] sm:$0xff]  ;;  %1364 = vmatpush3.msra.mxu0 %v254_v12  ;;  %1375 = vmatpush3.msra.mxu1 %v258_v13  ;;  %v271_v35 = vld [vmem:[%s2119_s3 + $0x90] sm:$0xff]  ;;  %v270_v37 = vld [vmem:[%s2119_s3 + $0x88] sm:$0xff]  ;;  %s1491_s13 = smul.u32 96, %s210_s12  ;;  %s1577_s11 = scalar_lea.vmem %s1576_s10, 3072 }
  0x1d   : > { %v223_v1 = vsel %vm222_vm0, %v221_v0, 0.0  ;;  %1365 = vmatprep.subr.mxu0 %v1665_v7  ;;  %1376 = vmatprep.subr.mxu1 %v1665_v7  ;;  %v261_v31 = vld [vmem:[%s2119_s3 + $0x40] sm:$0xff]  ;;  %v275_v36 = vld [vmem:[%s2119_s3 + $0xb0] sm:$0xff]  ;;  %v274_v38 = vld [vmem:[%s2119_s3 + $0xa8] sm:$0xff]  ;;  %s1492_s23 = smul.u32 24, %s1651_s19 }
  0x1e   : > { %224 = vadd.xlane.f32.xlu0 %v223_v1  ;;  %1366 = vmatpush3.msra.mxu0 %v253_v14  ;;  %v265_v32 = vld [vmem:[%s2119_s3 + $0x60] sm:$0xff]  ;;  %v280_v41 = vld [vmem:[%s2119_s3 + $0xd8] sm:$0xff]  ;;  %v279_v43 = vld [vmem:[%s2119_s3 + $0xd0] sm:$0xff]  ;;  %s2027_s14 = scalar_lea.vmem [#allocation2], %s1491_s13 }
  0x1f   : > { %1377 = vmatpush3.msra.mxu1 %v257_v15  ;;  %1367 = vmatprep.mubr.msk.f32.mxu0 %vm1666_vm1, %v1665_v7  ;;  %v269_v39 = vld [vmem:[%s2119_s3 + $0x80] sm:$0xff]  ;;  %v284_v42 = vld [vmem:[%s2119_s3 + $0xf8] sm:$0xff]  ;;  %v283_v44 = vld [vmem:[%s2119_s3 + $0xf0] sm:$0xff]  ;;  %s1180_s24 = sadd.s32 %s1647_s18, %s1492_s23  ;;  %s1183_s30 = sshll.u32 %s2027_s14, 4  ;;  %s2057_s30 = int_to_ptr.vmem [resolvable:$true] %s1183_s30 }
  0x20   : > { %1378 = vmatprep.mubr.msk.f32.mxu1 %vm1666_vm1, %v1665_v7  ;;  %1381 = vmatprep.subr.mxu0 %v1665_v7  ;;  %v273_v40 = vld [vmem:[%s2119_s3 + $0xa0] sm:$0xff]  ;;  %v278_v45 = vld [vmem:[%s2119_s3 + $0xc8] sm:$0xff]  ;;  %v288_v49 = vld [vmem:[%s2119_s3 + $0x118] sm:$0xff]  ;;  %s1296_s27 = sshll.u32 %s1180_s24, 7  ;;  %s2065_s18 = scalar_lea.sflag [#allocation3], %s210_s12 }
  0x21   : > { %1392 = vmatprep.subr.mxu1 %v1665_v7  ;;  %v282_v46 = vld [vmem:[%s2119_s3 + $0xe8] sm:$0xff]  ;;  %v277_v47 = vld [vmem:[%s2119_s3 + $0xc0] sm:$0xff]  ;;  %v292_v50 = vld [vmem:[%s2119_s3 + $0x138] sm:$0xff]  ;;  %s2055_s8 = scalar_lea.hbm %s2120_s4, %s1296_s27  ;;  %s1571_s19 = scalar_lea.vmem %s2057_s30, 1536 }
  0x22   : > { %v281_v48 = vld [vmem:[%s2119_s3 + $0xe0] sm:$0xff]  ;;  %v287_v51 = vld [vmem:[%s2119_s3 + $0x110] sm:$0xff]  ;;  %v286_v53 = vld [vmem:[%s2119_s3 + $0x108] sm:$0xff]  ;;  %p1572_p0 = scmp.ne.s32.totalorder %s2057_s30, %s1571_s19  ;;  %p1578_p4 = scmp.lt.s32.totalorder %s2057_s30, %s1576_s10 }
  0x23   : > { %v291_v52 = vld [vmem:[%s2119_s3 + $0x130] sm:$0xff]  ;;  %v290_v54 = vld [vmem:[%s2119_s3 + $0x128] sm:$0xff]  ;;  %v285_v55 = vld [vmem:[%s2119_s3 + $0x100] sm:$0xff]  ;;  %p1579_p5 = scmp.lt.s32.totalorder %s1577_s11, %s1571_s19 }
  0x24   : > { %v289_v56 = vld [vmem:[%s2119_s3 + $0x120] sm:$0xff]  ;;  %v296_v57 = vld [vmem:[%s2119_s3 + $0x158] sm:$0xff]  ;;  %v295_v59 = vld [vmem:[%s2119_s3 + $0x150] sm:$0xff]  ;;  %p1573_p1 = pnand %p1572_p0, %p1747_p3 }
  0x25   : > { %v300_v58 = vld [vmem:[%s2119_s3 + $0x178] sm:$0xff]  ;;  %v299_v60 = vld [vmem:[%s2119_s3 + $0x170] sm:$0xff]  ;;  %v294_v61 = vld [vmem:[%s2119_s3 + $0x148] sm:$0xff]  ;;  %p1580_p6 = por %p1579_p5, %p1578_p4 }
  0x26   : > { %v298_v62 = vld [vmem:[%s2119_s3 + $0x168] sm:$0xff]  ;;  %v293_v63 = vld [vmem:[%s2119_s3 + $0x140] sm:$0xff]  ;;  %p1574_p2 = pneg %p1573_p1 }
  0x28   : > { %p1581_p7 = pnand %p1580_p6, %p1574_p2 }
  0xa7   : > { %v225_v2 = vpop.xlane.xlu0 %224 }
  0xa8   : > { %v227_v3 = vmul.f32 0.03125, %v225_v2 }
  0xaa   : > { %v228_v4 = vsub.f32 %v221_v0, %v227_v3  ;;  %v297_v0 = vld [vmem:[%s2119_s3 + $0x160] sm:$0xff] }
  0xac   : > { %v229_v5 = vmul.f32 %v228_v4, %v228_v4 }
  0xae   : > { %v230_v6 = vsel %vm222_vm0, %v229_v5, 0.0 }
  0xaf   : > { %231 = vadd.xlane.f32.xlu0 %v230_v6 }
 0x138   : > { %v232_v16 = vpop.xlane.xlu0 %231 }
 0x139   : > { %v233_v17 = vmul.f32 0.03125, %v232_v16 }
 0x13b   : > { %v234_v18 = vadd.f32 1e-05, %v233_v17 }
 0x13d   : > { %1569 = vrsqrt.f32 %v234_v18 }
 0x14a   : > { %v1570_v19 = vpop.eup %1569 }
 0x14b   : > { %v236_v21 = vmul.f32 %v1570_v19, %v228_v4 }
 0x14d   : > { %v244_v23 = vmul.f32 %v1271_v20, %v236_v21 }
 0x14f   : > { %v1820_v24 = vadd.f32 %v1272_v22, %v244_v23 }
 0x151   : > { %1368 = vmatmul.mubr.msk.f32.vlgmr.msra.gmra.mxu0 %vm222_vm0, %v1820_v24  ;;  %1379 = vmatmul.mubr.msk.f32.vlgmr.msra.gmra.mxu1 %vm222_vm0, %v1820_v24 }
 0x152   : > { %1382 = vmatpush3.msra.mxu0 %v264_v25  ;;  %1393 = vmatpush3.msra.mxu1 %v268_v26 }
 0x153   : > { %1383 = vmatprep.subr.mxu0 %v1665_v7  ;;  %1394 = vmatprep.subr.mxu1 %v1665_v7 }
 0x154   : > { %1384 = vmatpush3.msra.mxu0 %v263_v27  ;;  %1395 = vmatpush3.msra.mxu1 %v267_v28 }
 0x155   : > { %1385 = vmatprep.subr.mxu0 %v1665_v7  ;;  %1396 = vmatprep.subr.mxu1 %v1665_v7 }
 0x156   : > { %1386 = vmatpush3.msra.mxu0 %v262_v29  ;;  %1397 = vmatpush3.msra.mxu1 %v266_v30 }
 0x157   : > { %1387 = vmatprep.subr.mxu0 %v1665_v7  ;;  %1398 = vmatprep.subr.mxu1 %v1665_v7 }
 0x158   : > { %1388 = vmatpush3.msra.mxu0 %v261_v31  ;;  %1389 = vmatprep.mubr.msk.f32.mxu0 %vm1666_vm1, %v1665_v7 }
 0x159   : > { %1399 = vmatpush3.msra.mxu1 %v265_v32  ;;  %1400 = vmatprep.mubr.msk.f32.mxu1 %vm1666_vm1, %v1665_v7 }
 0x15a   : > { %1390 = vmatmul.mubr.msk.f32.vlgmr.msra.gmra.mxu0 %vm222_vm0, %v1820_v24  ;;  %1401 = vmatmul.mubr.msk.f32.vlgmr.msra.gmra.mxu1 %vm222_vm0, %v1820_v24 }
 0x15b   : > { %1403 = vmatprep.subr.mxu0 %v1665_v7  ;;  %1414 = vmatprep.subr.mxu1 %v1665_v7 }
 0x15c   : > { %1404 = vmatpush3.msra.mxu0 %v272_v33  ;;  %1415 = vmatpush3.msra.mxu1 %v276_v34 }
 0x15d   : > { %1405 = vmatprep.subr.mxu0 %v1665_v7  ;;  %1416 = vmatprep.subr.mxu1 %v1665_v7 }
 0x15e   : > { %1406 = vmatpush3.msra.mxu0 %v271_v35  ;;  %1417 = vmatpush3.msra.mxu1 %v275_v36 }
 0x15f   : > { %1407 = vmatprep.subr.mxu0 %v1665_v7  ;;  %1418 = vmatprep.subr.mxu1 %v1665_v7 }
 0x160   : > { %1408 = vmatpush3.msra.mxu0 %v270_v37  ;;  %1419 = vmatpush3.msra.mxu1 %v274_v38 }
 0x161   : > { %1409 = vmatprep.subr.mxu0 %v1665_v7  ;;  %1420 = vmatprep.subr.mxu1 %v1665_v7 }
 0x162   : > { %1410 = vmatpush3.msra.mxu0 %v269_v39  ;;  %1411 = vmatprep.mubr.msk.f32.mxu0 %vm1666_vm1, %v1665_v7 }
 0x163   : > { %1421 = vmatpush3.msra.mxu1 %v273_v40  ;;  %1422 = vmatprep.mubr.msk.f32.mxu1 %vm1666_vm1, %v1665_v7 }
 0x164   : > { %1412 = vmatmul.mubr.msk.f32.vlgmr.msra.gmra.mxu0 %vm222_vm0, %v1820_v24  ;;  %1423 = vmatmul.mubr.msk.f32.vlgmr.msra.gmra.mxu1 %vm222_vm0, %v1820_v24 }
 0x165   : > { %1425 = vmatprep.subr.mxu0 %v1665_v7  ;;  %1436 = vmatprep.subr.mxu1 %v1665_v7 }
 0x166   : > { %1426 = vmatpush3.msra.mxu0 %v280_v41  ;;  %1437 = vmatpush3.msra.mxu1 %v284_v42 }
 0x167   : > { %1427 = vmatprep.subr.mxu0 %v1665_v7  ;;  %1438 = vmatprep.subr.mxu1 %v1665_v7 }
 0x168   : > { %1428 = vmatpush3.msra.mxu0 %v279_v43  ;;  %1439 = vmatpush3.msra.mxu1 %v283_v44 }
 0x169   : > { %1429 = vmatprep.subr.mxu0 %v1665_v7  ;;  %1440 = vmatprep.subr.mxu1 %v1665_v7 }
 0x16a   : > { %1430 = vmatpush3.msra.mxu0 %v278_v45  ;;  %1441 = vmatpush3.msra.mxu1 %v282_v46 }
 0x16b   : > { %1431 = vmatprep.subr.mxu0 %v1665_v7  ;;  %1442 = vmatprep.subr.mxu1 %v1665_v7 }
 0x16c   : > { %1432 = vmatpush3.msra.mxu0 %v277_v47  ;;  %1433 = vmatprep.mubr.msk.f32.mxu0 %vm1666_vm1, %v1665_v7 }
 0x16d   : > { %1443 = vmatpush3.msra.mxu1 %v281_v48  ;;  %1444 = vmatprep.mubr.msk.f32.mxu1 %vm1666_vm1, %v1665_v7 }
 0x16e   : > { %1434 = vmatmul.mubr.msk.f32.vlgmr.msra.gmra.mxu0 %vm222_vm0, %v1820_v24  ;;  %1445 = vmatmul.mubr.msk.f32.vlgmr.msra.gmra.mxu1 %vm222_vm0, %v1820_v24 }
 0x16f   : > { %1447 = vmatprep.subr.mxu0 %v1665_v7  ;;  %1458 = vmatprep.subr.mxu1 %v1665_v7 }
 0x170   : > { %1448 = vmatpush3.msra.mxu0 %v288_v49  ;;  %1459 = vmatpush3.msra.mxu1 %v292_v50 }
 0x171   : > { %1449 = vmatprep.subr.mxu0 %v1665_v7  ;;  %1460 = vmatprep.subr.mxu1 %v1665_v7 }
 0x172   : > { %1450 = vmatpush3.msra.mxu0 %v287_v51  ;;  %1461 = vmatpush3.msra.mxu1 %v291_v52 }
 0x173   : > { %1451 = vmatprep.subr.mxu0 %v1665_v7  ;;  %1462 = vmatprep.subr.mxu1 %v1665_v7 }
 0x174   : > { %1452 = vmatpush3.msra.mxu0 %v286_v53  ;;  %1463 = vmatpush3.msra.mxu1 %v290_v54 }
 0x175   : > { %1453 = vmatprep.subr.mxu0 %v1665_v7  ;;  %1464 = vmatprep.subr.mxu1 %v1665_v7 }
 0x176   : > { %1454 = vmatpush3.msra.mxu0 %v285_v55  ;;  %1455 = vmatprep.mubr.msk.f32.mxu0 %vm1666_vm1, %v1665_v7 }
 0x177   : > { %1465 = vmatpush3.msra.mxu1 %v289_v56  ;;  %1466 = vmatprep.mubr.msk.f32.mxu1 %vm1666_vm1, %v1665_v7 }
 0x178   : > { %1456 = vmatmul.mubr.msk.f32.vlgmr.msra.gmra.mxu0 %vm222_vm0, %v1820_v24  ;;  %1467 = vmatmul.mubr.msk.f32.vlgmr.msra.gmra.mxu1 %vm222_vm0, %v1820_v24 }
 0x179   : > { %1469 = vmatprep.subr.mxu0 %v1665_v7  ;;  %1480 = vmatprep.subr.mxu1 %v1665_v7 }
 0x17a   : > { %1470 = vmatpush3.msra.mxu0 %v296_v57  ;;  %1481 = vmatpush3.msra.mxu1 %v300_v58 }
 0x17b   : > { %1471 = vmatprep.subr.mxu0 %v1665_v7  ;;  %1482 = vmatprep.subr.mxu1 %v1665_v7 }
 0x17c   : > { %1472 = vmatpush3.msra.mxu0 %v295_v59  ;;  %1483 = vmatpush3.msra.mxu1 %v299_v60 }
 0x17d   : > { %1473 = vmatprep.subr.mxu0 %v1665_v7  ;;  %1484 = vmatprep.subr.mxu1 %v1665_v7 }
 0x17e   : > { %1474 = vmatpush3.msra.mxu0 %v294_v61  ;;  %1485 = vmatpush3.msra.mxu1 %v298_v62 }
 0x17f   : > { %1475 = vmatprep.subr.mxu0 %v1665_v7  ;;  %1486 = vmatprep.subr.mxu1 %v1665_v7 }
 0x180   : > { %1476 = vmatpush3.msra.mxu0 %v293_v63  ;;  %1477 = vmatprep.mubr.msk.f32.mxu0 %vm1666_vm1, %v1665_v7 }
 0x181   : > { %1487 = vmatpush3.msra.mxu1 %v297_v0  ;;  %1488 = vmatprep.mubr.msk.f32.mxu1 %vm1666_vm1, %v1665_v7 }
 0x182   : > { %1478 = vmatmul.mubr.msk.f32.vlgmr.msra.gmra.mxu0 %vm222_vm0, %v1820_v24  ;;  %1489 = vmatmul.mubr.msk.f32.vlgmr.msra.gmra.mxu1 %vm222_vm0, %v1820_v24 }
 0x211   : > { %v370_v1 = vpop.f32.mrf.mxu0  ;;  %v442_v2 = vpop.f32.mrf.mxu1 }
 0x212   : > { %375 = vst.msk [vmem:[%s2027_s14] sm:$0xff] %vm374_vm2, %v370_v1  ;;  %1275 = vst.msk [vmem:[%s2027_s14 + $0x8] sm:$0xff] %vm374_vm2, %v442_v2 }
 0x213   : > { %v1369_v3 = vpop.f32.mrf.mxu0  ;;  %v1380_v4 = vpop.f32.mrf.mxu1 }
 0x21a   : > { %v514_v5 = vpop.f32.mrf.mxu0  ;;  %v586_v6 = vpop.f32.mrf.mxu1 }
 0x21b   : > { %1277 = vst.msk [vmem:[%s2027_s14 + $0x10] sm:$0xff] %vm374_vm2, %v514_v5  ;;  %1279 = vst.msk [vmem:[%s2027_s14 + $0x18] sm:$0xff] %vm374_vm2, %v586_v6 }
 0x21c   : > { %v1391_v7 = vpop.f32.mrf.mxu0  ;;  %v1402_v8 = vpop.f32.mrf.mxu1 }
 0x224   : > { %v658_v9 = vpop.f32.mrf.mxu0  ;;  %v730_v10 = vpop.f32.mrf.mxu1 }
 0x225   : > { %1281 = vst.msk [vmem:[%s2027_s14 + $0x20] sm:$0xff] %vm374_vm2, %v658_v9  ;;  %1283 = vst.msk [vmem:[%s2027_s14 + $0x28] sm:$0xff] %vm374_vm2, %v730_v10 }
 0x226   : > { %v1413_v11 = vpop.f32.mrf.mxu0  ;;  %v1424_v12 = vpop.f32.mrf.mxu1 }
 0x22e   : > { %v802_v13 = vpop.f32.mrf.mxu0  ;;  %v874_v14 = vpop.f32.mrf.mxu1 }
 0x22f   : > { %1285 = vst.msk [vmem:[%s2027_s14 + $0x30] sm:$0xff] %vm374_vm2, %v802_v13  ;;  %1287 = vst.msk [vmem:[%s2027_s14 + $0x38] sm:$0xff] %vm374_vm2, %v874_v14 }
 0x230   : > { %v1435_v15 = vpop.f32.mrf.mxu0  ;;  %v1446_v16 = vpop.f32.mrf.mxu1 }
 0x238   : > { %v946_v17 = vpop.f32.mrf.mxu0  ;;  %v1018_v18 = vpop.f32.mrf.mxu1 }
 0x239   : > { %1289 = vst.msk [vmem:[%s2027_s14 + $0x40] sm:$0xff] %vm374_vm2, %v946_v17  ;;  %1291 = vst.msk [vmem:[%s2027_s14 + $0x48] sm:$0xff] %vm374_vm2, %v1018_v18 }
 0x23a   : > { %v1457_v19 = vpop.f32.mrf.mxu0  ;;  %v1468_v20 = vpop.f32.mrf.mxu1 }
 0x242   : > { %v1090_v21 = vpop.f32.mrf.mxu0  ;;  %v1162_v22 = vpop.f32.mrf.mxu1 }
 0x243   : > { %1293 = vst.msk [vmem:[%s2027_s14 + $0x50] sm:$0xff] %vm374_vm2, %v1090_v21  ;;  %1295 = vst.msk [vmem:[%s2027_s14 + $0x58] sm:$0xff] %vm374_vm2, %v1162_v22 }
 0x244   : > { %v1479_v23 = vpop.f32.mrf.mxu0  ;;  %v1490_v24 = vpop.f32.mrf.mxu1 }
 0x245   : > { %1584 = shalt.err (!%p1581_p7)
}
 0x246   : > { %s1585_s12 = scalar_lea.hbm %s2055_s8, 1536  ;;  %s1589_s23 = scalar_lea.hbm %s2120_s4, 6144 }
 0x247   : > { %p1586_p9 = scmp.ne.s32.totalorder %s2055_s8, %s1585_s12  ;;  %p1590_p12 = scmp.lt.s32.totalorder %s2055_s8, %s2120_s4 }
 0x248   : > { %p1591_p13 = scmp.lt.s32.totalorder %s1589_s23, %s1585_s12 }
 0x249   : > { %p1587_p10 = pnand %p1586_p9, %p1747_p3 }
 0x24a   : > { %p1592_p0 = por %p1591_p13, %p1590_p12 }
 0x24b   : > { %p1588_p11 = pneg %p1587_p10 }
 0x24d   : > { %p1593_p1 = pnand %p1592_p0, %p1588_p11 }
 0x24f   : > { %1596 = shalt.err (!%p1593_p1)
}
 0x250   : > { %s1668_s5 = smov 128   ;;  %s1669_s6 = smov 256  }
 0x251   : > { %s1670_s19 = smov 8  }
 0x252   : > { %1493 = dma.vmem_to_hbm [thread:$0]  (%p1747_p3), %s2057_s30, 1536, %s2055_s8, %s2065_s18, %s1668_s5, %s1669_s6, %s1670_s19  }
 0x253 PF: > { %p1499_p2 = scmp.ge.s32.totalorder %s1663_s22, 2  ;;  %s1198_s9 = sand.u32 1, %s1635_s15  }
 0x254   : > { %s1199_s10 = scalar_lea.sflag [#allocation3], %s1198_s9 }
 0x255   : > { %p1496_p4 = pnand %p1499_p2, %p1756_p8 }
 0x257   : > { %p1497_p5 = pneg %p1496_p4 }
 0x259   : > { %1630 = dma.done.wait (%p1497_p5), %s1199_s10, 1536  }
 0x25a   : > { %1632 = vsyncadd (%p1497_p5), %s1199_s10, 4294965760  ;;  %s17_s22 = sadd.s32 1, %s1663_s22   ;;  %s2123_s15 = smov %s1639_s16 }
 0x25b   : > { %p14_p6 = scmp.ge.s32.totalorder %s17_s22, 6   ;;  %s2124_s16 = smov %s1643_s17 }
 0x25c   : > { %s2125_s17 = smov %s1765_s7  ;;  %s2126_s18 = smov %s1655_s20 }
 0x25d   : > { %s2127_s19 = smov %s1659_s21  ;;  %s2128_s20 = smov %s2131_s25 }
 0x25e   : > { %s2129_s21 = smov %s2135_s26  ;;  %16 = sbr.rel (!%p14_p6) target bundleno = 5 (0x5), region = 82 }
 0x263   :  { %1204 = vsyncpa [#allocation3], 1 }
 0x264   :  { %1206 = vsyncpa [#allocation3 + $0x1], 1 }

</bundles_post_ra>
